<compile_context>
chip_gen: v6e
topology: v6e:2x2x1
jax: 0.10.0
libtpu: 0.0.40
codegen_flags: <defaults>
</compile_context>

<pallas_src>
import jax
import jax.numpy as jnp
from jax.experimental import pallas as pl
from jax.experimental.pallas import tpu as pltpu

_LANE = 128
_CHUNK = 8192  # in-kernel lane-axis chunk (elements); bounds vreg pressure


def _outblock_kernel(w_ref, b_ref, x_ref, o_ref):
    """w_ref: (C_in, C_out) SMEM f32, b_ref: (C_out,) SMEM f32,
       x_ref: (C_in, TM) VMEM,        o_ref: (C_out, TM) VMEM."""
    c_in, tm = x_ref.shape
    c_out = o_ref.shape[0]

    # Hoist the tiny weight / bias scalars out of the chunk loop (sregs).
    wv = [[w_ref[ci, co] for co in range(c_out)] for ci in range(c_in)]
    bv = [b_ref[co] for co in range(c_out)]

    # Walk the lane axis in vreg-friendly static chunks.  Each chunk's values
    # die at its store, so live vector pressure stays low while the DMA block
    # (TM) stays large.
    start = 0
    while start < tm:
        size = min(_CHUNK, tm - start)
        stop = start + size
        for co in range(c_out):
            acc = x_ref[0:1, start:stop] * wv[0][co]
            for ci in range(1, c_in):
                acc = acc + x_ref[ci:ci + 1, start:stop] * wv[ci][co]
            o_ref[co:co + 1, start:stop] = (acc + bv[co]).astype(o_ref.dtype)
        start = stop


def _choose_tile(m: int, c_in: int, c_out: int, itemsize: int) -> int:
    """Pick the lane-dense tile length TM along the flattened spatial axis."""
    # Target ~4 MiB of (in + out) HBM traffic per grid step: big enough to
    # amortize the ~0.35 us per-step overhead against DMA time (even at v7x's
    # 3.2 TB/s), small enough that double-buffered blocks stay ~8 MiB.
    budget = 4 * 1024 * 1024
    cap = budget // max(1, (c_in + c_out) * itemsize)
    if cap >= _CHUNK:
        cap = (cap // _CHUNK) * _CHUNK        # multiple of the in-kernel chunk
    else:
        cap = max(_LANE, (cap // _LANE) * _LANE)
    if m <= cap:
        return m                              # full-dim block is always legal
    return cap                                # multiple of 128 (lane-aligned)


def outblock_pointwise(x_r: jnp.ndarray, w: jnp.ndarray, b: jnp.ndarray) -> jnp.ndarray:
    """x_r: (N, C_in, M), w: (C_in, C_out), b: (C_out,) -> (N, C_out, M)."""
    n, c_in, m = x_r.shape
    c_out = w.shape[1]
    tm = _choose_tile(m, c_in, c_out, x_r.dtype.itemsize)
    grid = (n, pl.cdiv(m, tm))

    # Keep the tiny params as 32-bit scalars for SMEM / f32 accumulation.
    w32 = w.astype(jnp.float32)
    b32 = b.astype(jnp.float32)

    out_bytes = n * c_out * m * x_r.dtype.itemsize
    cost = pl.CostEstimate(
        flops=2 * n * m * c_in * c_out,
        transcendentals=0,
        bytes_accessed=(x_r.size * x_r.dtype.itemsize + out_bytes
                        + w32.size * 4 + b32.size * 4),
    )

    return pl.pallas_call(
        _outblock_kernel,
        out_shape=jax.ShapeDtypeStruct((n, c_out, m), x_r.dtype),
        grid=grid,
        in_specs=[
            # Whole (tiny) weight / bias arrays resident in SMEM.
            pl.BlockSpec(memory_space=pltpu.MemorySpace.SMEM),
            pl.BlockSpec(memory_space=pltpu.MemorySpace.SMEM),
            # Activation stream: batch dim squeezed, channels full, spatial tiled.
            pl.BlockSpec((None, c_in, tm), lambda ni, mi: (ni, 0, mi)),
        ],
        out_specs=pl.BlockSpec((None, c_out, tm), lambda ni, mi: (ni, 0, mi)),
        compiler_params=pltpu.CompilerParams(
            dimension_semantics=("parallel", "parallel")),
        cost_estimate=cost,
    )(w32, b32, x_r)


def outblock_forward(x: jnp.ndarray, w: jnp.ndarray, b: jnp.ndarray) -> jnp.ndarray:
    """Full OutBlock forward.

    x: (N, C_in, *spatial) in NC[D]HW layout (2D or 3D spatial),
    w: (C_in, C_out) squeezed ConvTranspose weight, b: (C_out,).
    Returns (N, C_out, *spatial).
    """
    n, c_in = x.shape[0], x.shape[1]
    spatial = tuple(x.shape[2:])
    m = 1
    for s in spatial:
        m *= s
    c_out = w.shape[1]
    # Free reshape (collapses contiguous trailing dims) -> lane-dense spatial axis.
    x_r = x.reshape(n, c_in, m)
    y_r = outblock_pointwise(x_r, w, b)
    return y_r.reshape((n, c_out) + spatial)


if __name__ == "__main__":
    key = jax.random.PRNGKey(0)
    kx, kw, kb, kx3 = jax.random.split(key, 4)

    # Module config (spatial_dims=2): in_channels=4, out_channels=3.
    N, C_IN, C_OUT, H, W = 2, 4, 3, 16, 16
    x = jax.random.normal(kx, (N, C_IN, H, W), dtype=jnp.float32)
    # ConvTranspose2d weight shape is (C_in, C_out, 1, 1); 1x1 spatial squeezed.
    w = jax.random.normal(kw, (C_IN, C_OUT), dtype=jnp.float32) * 0.1
    b = jax.random.normal(kb, (C_OUT,), dtype=jnp.float32) * 0.1

    y = jax.block_until_ready(outblock_forward(x, w, b))
    y_ref = jnp.einsum("nchw,co->nohw", x, w) + b.reshape(1, C_OUT, 1, 1)
    assert y.shape == (N, C_OUT, H, W)
    assert jnp.allclose(y, y_ref, atol=1e-5, rtol=1e-5)

    # Also exercise the spatial_dims=3 path (same kernel, collapsed spatial).
    D3, H3, W3 = 4, 8, 8
    x3 = jax.random.normal(kx3, (1, C_IN, D3, H3, W3), dtype=jnp.float32)
    y3 = jax.block_until_ready(outblock_forward(x3, w, b))
    y3_ref = jnp.einsum("ncdhw,co->nodhw", x3, w) + b.reshape(1, C_OUT, 1, 1, 1)
    assert y3.shape == (1, C_OUT, D3, H3, W3)
    assert jnp.allclose(y3, y3_ref, atol=1e-5, rtol=1e-5)

    print("KERNEL_OK")
</pallas_src>

<mosaic_0001>
module attributes {stable_mosaic.version = 11 : i64} {
  func.func @_outblock_kernel(%arg0: i32, %arg1: i32, %arg2: memref<4x3xf32, #tpu.memory_space<smem>>, %arg3: memref<3xf32, #tpu.memory_space<smem>>, %arg4: memref<1x4x256xf32, #tpu.memory_space<vmem>>, %arg5: memref<1x3x256xf32, #tpu.memory_space<vmem>>) attributes {dimension_semantics = [#tpu.dimension_semantics<parallel>, #tpu.dimension_semantics<parallel>], iteration_bounds = array<i64: 2, 1>, scalar_prefetch = 0 : i64, scratch_operands = 0 : i64, tpu.core_type = #tpu.core_type<tc>, window_params = [{transform_indices = @transform_0, window_bounds = array<i64: 4, 3>}, {transform_indices = @transform_1, window_bounds = array<i64: 3>}, {transform_indices = @transform_2, window_bounds = array<i64: 1, 4, 256>}, {transform_indices = @transform_3, window_bounds = array<i64: 1, 3, 256>}]} {
    %c0 = arith.constant 0 : index
    %c0_0 = arith.constant 0 : index
    %0 = memref.load %arg2[%c0, %c0_0] : memref<4x3xf32, #tpu.memory_space<smem>>
    %c0_1 = arith.constant 0 : index
    %c1 = arith.constant 1 : index
    %1 = memref.load %arg2[%c0_1, %c1] : memref<4x3xf32, #tpu.memory_space<smem>>
    %c0_2 = arith.constant 0 : index
    %c2 = arith.constant 2 : index
    %2 = memref.load %arg2[%c0_2, %c2] : memref<4x3xf32, #tpu.memory_space<smem>>
    %c1_3 = arith.constant 1 : index
    %c0_4 = arith.constant 0 : index
    %3 = memref.load %arg2[%c1_3, %c0_4] : memref<4x3xf32, #tpu.memory_space<smem>>
    %c1_5 = arith.constant 1 : index
    %c1_6 = arith.constant 1 : index
    %4 = memref.load %arg2[%c1_5, %c1_6] : memref<4x3xf32, #tpu.memory_space<smem>>
    %c1_7 = arith.constant 1 : index
    %c2_8 = arith.constant 2 : index
    %5 = memref.load %arg2[%c1_7, %c2_8] : memref<4x3xf32, #tpu.memory_space<smem>>
    %c2_9 = arith.constant 2 : index
    %c0_10 = arith.constant 0 : index
    %6 = memref.load %arg2[%c2_9, %c0_10] : memref<4x3xf32, #tpu.memory_space<smem>>
    %c2_11 = arith.constant 2 : index
    %c1_12 = arith.constant 1 : index
    %7 = memref.load %arg2[%c2_11, %c1_12] : memref<4x3xf32, #tpu.memory_space<smem>>
    %c2_13 = arith.constant 2 : index
    %c2_14 = arith.constant 2 : index
    %8 = memref.load %arg2[%c2_13, %c2_14] : memref<4x3xf32, #tpu.memory_space<smem>>
    %c3 = arith.constant 3 : index
    %c0_15 = arith.constant 0 : index
    %9 = memref.load %arg2[%c3, %c0_15] : memref<4x3xf32, #tpu.memory_space<smem>>
    %c3_16 = arith.constant 3 : index
    %c1_17 = arith.constant 1 : index
    %10 = memref.load %arg2[%c3_16, %c1_17] : memref<4x3xf32, #tpu.memory_space<smem>>
    %c3_18 = arith.constant 3 : index
    %c2_19 = arith.constant 2 : index
    %11 = memref.load %arg2[%c3_18, %c2_19] : memref<4x3xf32, #tpu.memory_space<smem>>
    %c0_20 = arith.constant 0 : index
    %12 = memref.load %arg3[%c0_20] : memref<3xf32, #tpu.memory_space<smem>>
    %c1_21 = arith.constant 1 : index
    %13 = memref.load %arg3[%c1_21] : memref<3xf32, #tpu.memory_space<smem>>
    %c2_22 = arith.constant 2 : index
    %14 = memref.load %arg3[%c2_22] : memref<3xf32, #tpu.memory_space<smem>>
    %c0_23 = arith.constant 0 : index
    %c0_24 = arith.constant 0 : index
    %c0_25 = arith.constant 0 : index
    %15 = vector.load %arg4[%c0_23, %c0_24, %c0_25] : memref<1x4x256xf32, #tpu.memory_space<vmem>>, vector<1x1x256xf32>
    %16 = vector.shape_cast %15 : vector<1x1x256xf32> to vector<1x256xf32>
    %17 = vector.broadcast %0 : f32 to vector<1x256xf32>
    %18 = arith.mulf %16, %17 : vector<1x256xf32>
    %c0_26 = arith.constant 0 : index
    %c1_27 = arith.constant 1 : index
    %c0_28 = arith.constant 0 : index
    %19 = vector.load %arg4[%c0_26, %c1_27, %c0_28] : memref<1x4x256xf32, #tpu.memory_space<vmem>>, vector<1x1x256xf32>
    %20 = vector.shape_cast %19 : vector<1x1x256xf32> to vector<1x256xf32>
    %21 = vector.broadcast %3 : f32 to vector<1x256xf32>
    %22 = arith.mulf %20, %21 : vector<1x256xf32>
    %23 = arith.addf %18, %22 : vector<1x256xf32>
    %c0_29 = arith.constant 0 : index
    %c2_30 = arith.constant 2 : index
    %c0_31 = arith.constant 0 : index
    %24 = vector.load %arg4[%c0_29, %c2_30, %c0_31] : memref<1x4x256xf32, #tpu.memory_space<vmem>>, vector<1x1x256xf32>
    %25 = vector.shape_cast %24 : vector<1x1x256xf32> to vector<1x256xf32>
    %26 = vector.broadcast %6 : f32 to vector<1x256xf32>
    %27 = arith.mulf %25, %26 : vector<1x256xf32>
    %28 = arith.addf %23, %27 : vector<1x256xf32>
    %c0_32 = arith.constant 0 : index
    %c3_33 = arith.constant 3 : index
    %c0_34 = arith.constant 0 : index
    %29 = vector.load %arg4[%c0_32, %c3_33, %c0_34] : memref<1x4x256xf32, #tpu.memory_space<vmem>>, vector<1x1x256xf32>
    %30 = vector.shape_cast %29 : vector<1x1x256xf32> to vector<1x256xf32>
    %31 = vector.broadcast %9 : f32 to vector<1x256xf32>
    %32 = arith.mulf %30, %31 : vector<1x256xf32>
    %33 = arith.addf %28, %32 : vector<1x256xf32>
    %34 = vector.broadcast %12 : f32 to vector<1x256xf32>
    %35 = arith.addf %33, %34 : vector<1x256xf32>
    %c0_35 = arith.constant 0 : index
    %c0_36 = arith.constant 0 : index
    %c0_37 = arith.constant 0 : index
    %36 = vector.load %arg5[%c0_35, %c0_36, %c0_37] : memref<1x3x256xf32, #tpu.memory_space<vmem>>, vector<1x1x256xf32>
    %37 = vector.shape_cast %36 : vector<1x1x256xf32> to vector<1x256xf32>
    %38 = vector.shape_cast %35 : vector<1x256xf32> to vector<1x1x256xf32>
    tpu.vector_store %arg5[%c0_35, %c0_36, %c0_37], %38 {strides = array<i32>} : memref<1x3x256xf32, #tpu.memory_space<vmem>>, vector<1x1x256xf32>,
    %c0_38 = arith.constant 0 : index
    %c0_39 = arith.constant 0 : index
    %c0_40 = arith.constant 0 : index
    %39 = vector.load %arg4[%c0_38, %c0_39, %c0_40] : memref<1x4x256xf32, #tpu.memory_space<vmem>>, vector<1x1x256xf32>
    %40 = vector.shape_cast %39 : vector<1x1x256xf32> to vector<1x256xf32>
    %41 = vector.broadcast %1 : f32 to vector<1x256xf32>
    %42 = arith.mulf %40, %41 : vector<1x256xf32>
    %c0_41 = arith.constant 0 : index
    %c1_42 = arith.constant 1 : index
    %c0_43 = arith.constant 0 : index
    %43 = vector.load %arg4[%c0_41, %c1_42, %c0_43] : memref<1x4x256xf32, #tpu.memory_space<vmem>>, vector<1x1x256xf32>
    %44 = vector.shape_cast %43 : vector<1x1x256xf32> to vector<1x256xf32>
    %45 = vector.broadcast %4 : f32 to vector<1x256xf32>
    %46 = arith.mulf %44, %45 : vector<1x256xf32>
    %47 = arith.addf %42, %46 : vector<1x256xf32>
    %c0_44 = arith.constant 0 : index
    %c2_45 = arith.constant 2 : index
    %c0_46 = arith.constant 0 : index
    %48 = vector.load %arg4[%c0_44, %c2_45, %c0_46] : memref<1x4x256xf32, #tpu.memory_space<vmem>>, vector<1x1x256xf32>
    %49 = vector.shape_cast %48 : vector<1x1x256xf32> to vector<1x256xf32>
    %50 = vector.broadcast %7 : f32 to vector<1x256xf32>
    %51 = arith.mulf %49, %50 : vector<1x256xf32>
    %52 = arith.addf %47, %51 : vector<1x256xf32>
    %c0_47 = arith.constant 0 : index
    %c3_48 = arith.constant 3 : index
    %c0_49 = arith.constant 0 : index
    %53 = vector.load %arg4[%c0_47, %c3_48, %c0_49] : memref<1x4x256xf32, #tpu.memory_space<vmem>>, vector<1x1x256xf32>
    %54 = vector.shape_cast %53 : vector<1x1x256xf32> to vector<1x256xf32>
    %55 = vector.broadcast %10 : f32 to vector<1x256xf32>
    %56 = arith.mulf %54, %55 : vector<1x256xf32>
    %57 = arith.addf %52, %56 : vector<1x256xf32>
    %58 = vector.broadcast %13 : f32 to vector<1x256xf32>
    %59 = arith.addf %57, %58 : vector<1x256xf32>
    %c0_50 = arith.constant 0 : index
    %c1_51 = arith.constant 1 : index
    %c0_52 = arith.constant 0 : index
    %60 = vector.load %arg5[%c0_50, %c1_51, %c0_52] : memref<1x3x256xf32, #tpu.memory_space<vmem>>, vector<1x1x256xf32>
    %61 = vector.shape_cast %60 : vector<1x1x256xf32> to vector<1x256xf32>
    %62 = vector.shape_cast %59 : vector<1x256xf32> to vector<1x1x256xf32>
    tpu.vector_store %arg5[%c0_50, %c1_51, %c0_52], %62 {strides = array<i32>} : memref<1x3x256xf32, #tpu.memory_space<vmem>>, vector<1x1x256xf32>,
    %c0_53 = arith.constant 0 : index
    %c0_54 = arith.constant 0 : index
    %c0_55 = arith.constant 0 : index
    %63 = vector.load %arg4[%c0_53, %c0_54, %c0_55] : memref<1x4x256xf32, #tpu.memory_space<vmem>>, vector<1x1x256xf32>
    %64 = vector.shape_cast %63 : vector<1x1x256xf32> to vector<1x256xf32>
    %65 = vector.broadcast %2 : f32 to vector<1x256xf32>
    %66 = arith.mulf %64, %65 : vector<1x256xf32>
    %c0_56 = arith.constant 0 : index
    %c1_57 = arith.constant 1 : index
    %c0_58 = arith.constant 0 : index
    %67 = vector.load %arg4[%c0_56, %c1_57, %c0_58] : memref<1x4x256xf32, #tpu.memory_space<vmem>>, vector<1x1x256xf32>
    %68 = vector.shape_cast %67 : vector<1x1x256xf32> to vector<1x256xf32>
    %69 = vector.broadcast %5 : f32 to vector<1x256xf32>
    %70 = arith.mulf %68, %69 : vector<1x256xf32>
    %71 = arith.addf %66, %70 : vector<1x256xf32>
    %c0_59 = arith.constant 0 : index
    %c2_60 = arith.constant 2 : index
    %c0_61 = arith.constant 0 : index
    %72 = vector.load %arg4[%c0_59, %c2_60, %c0_61] : memref<1x4x256xf32, #tpu.memory_space<vmem>>, vector<1x1x256xf32>
    %73 = vector.shape_cast %72 : vector<1x1x256xf32> to vector<1x256xf32>
    %74 = vector.broadcast %8 : f32 to vector<1x256xf32>
    %75 = arith.mulf %73, %74 : vector<1x256xf32>
    %76 = arith.addf %71, %75 : vector<1x256xf32>
    %c0_62 = arith.constant 0 : index
    %c3_63 = arith.constant 3 : index
    %c0_64 = arith.constant 0 : index
    %77 = vector.load %arg4[%c0_62, %c3_63, %c0_64] : memref<1x4x256xf32, #tpu.memory_space<vmem>>, vector<1x1x256xf32>
    %78 = vector.shape_cast %77 : vector<1x1x256xf32> to vector<1x256xf32>
    %79 = vector.broadcast %11 : f32 to vector<1x256xf32>
    %80 = arith.mulf %78, %79 : vector<1x256xf32>
    %81 = arith.addf %76, %80 : vector<1x256xf32>
    %82 = vector.broadcast %14 : f32 to vector<1x256xf32>
    %83 = arith.addf %81, %82 : vector<1x256xf32>
    %c0_65 = arith.constant 0 : index
    %c2_66 = arith.constant 2 : index
    %c0_67 = arith.constant 0 : index
    %84 = vector.load %arg5[%c0_65, %c2_66, %c0_67] : memref<1x3x256xf32, #tpu.memory_space<vmem>>, vector<1x1x256xf32>
    %85 = vector.shape_cast %84 : vector<1x1x256xf32> to vector<1x256xf32>
    %86 = vector.shape_cast %83 : vector<1x256xf32> to vector<1x1x256xf32>
    tpu.vector_store %arg5[%c0_65, %c2_66, %c0_67], %86 {strides = array<i32>} : memref<1x3x256xf32, #tpu.memory_space<vmem>>, vector<1x1x256xf32>,
    return
  }
  func.func @transform_0(%arg0: i32, %arg1: i32) -> (i32, i32) {
    %c0_i32 = arith.constant 0 : i32
    %c0_i32_0 = arith.constant 0 : i32
    %c0_i32_1 = arith.constant 0 : i32
    return %c0_i32, %c0_i32_0 : i32, i32
  }
  func.func @transform_1(%arg0: i32, %arg1: i32) -> i32 {
    %c0_i32 = arith.constant 0 : i32
    %c0_i32_0 = arith.constant 0 : i32
    return %c0_i32 : i32
  }
  func.func @transform_2(%arg0: i32, %arg1: i32) -> (i32, i32, i32) {
    %c0_i32 = arith.constant 0 : i32
    %c0_i32_0 = arith.constant 0 : i32
    return %arg0, %c0_i32, %arg1 : i32, i32, i32
  }
  func.func @transform_3(%arg0: i32, %arg1: i32) -> (i32, i32, i32) {
    %c0_i32 = arith.constant 0 : i32
    %c0_i32_0 = arith.constant 0 : i32
    return %arg0, %c0_i32, %arg1 : i32, i32, i32
  }
}

</mosaic_0001>

<bundles_post_ra>
// kernel: tpu_custom_call.1
= control target key start
LH: loop header
LB: loop body
LE: loop exit
PB: predicated region body
PF: predicated region fallthrough
CT: control target
= control target key end

     0   :  { %8 = vsyncpa [#allocation4], 0  ;;  %s872_s0 = inlined_call_operand.hbm [shape: f32[4,3], index: 0, kind: input, shape index: {}]   ;;  %s873_s1 = inlined_call_operand.vmem [shape: f32[3], index: 1, kind: input, shape index: {}]   ;;  %s874_s2 = inlined_call_operand.hbm [shape: f32[2,4,256], index: 2, kind: input, shape index: {}]   ;;  %s875_s3 = inlined_call_operand.vmem [shape: f32[2,3,256], index: 3, kind: output, shape index: {}]  }
   0x1   :  { %9 = vsyncpa [#allocation5], 0 }
   0x2   :  { %10 = vsyncpa [#allocation3], 0 }
   0x3   :  { %12 = vsyncpa [#allocation3 + $0x1], 0  ;;  %s695_s12 = smov 0   ;;  %s697_s13 = smov 0  }
   0x4   :  { %s699_s14 = smov 0   ;;  %s701_s15 = smov 0  }
   0x5   :  { %s703_s16 = smov 0   ;;  %s705_s17 = smov 0  }
   0x6 LB: > { %s439_s18 = sadd.s32 4294967295, %s670_s17   ;;  %p94_p0 = scmp.ne.s32.totalorder %s654_s13, %s650_s12  ;;  %s670_s17 = sphi %s705_s17, %s18_s17   ;;  %s666_s16 = sphi %s703_s16, %s888_s16   ;;  %s662_s15 = sphi %s701_s15, %s887_s15   ;;  %s658_s14 = sphi %s699_s14, %s886_s14   ;;  %s654_s13 = sphi %s697_s13, %s885_s13   ;;  %s650_s12 = sphi %s695_s12, %s884_s12  }
   0x7   : > { %p725_p1 = scmp.eq.s32.totalorder %s439_s18, 0  ;;  %p441_p2 = scmp.ge.s32.totalorder %s670_s17, 1 }
   0x8   : > { %p133_p3 = scmp.lt.s32.totalorder %s670_s17, 3  ;;  %s155_s24 = sshll.u32 %s873_s1, 4  ;;  %s156_s24 = int_to_ptr.vmem [resolvable:$true] %s155_s24 }
   0x9   : > { %p733_p4 = por %p725_p1, %p94_p0  ;;  %s30_s26 = sadd.s32 1, %s666_s16 }
   0xa   : > { %p737_p5 = pnand %p441_p2, %p133_p3  ;;  %p753_p8 = scmp.ge.s32.totalorder %s30_s26, 2 }
   0xb   : > { %s672_s28 = smov [#allocation2]   ;;  %s569_s4 = scalar_lea.vmem %s156_s24, 16 }
   0xc   : > { %p492_p6 = pneg %p737_p5  ;;  %p570_p9 = scmp.ne.s32.totalorder %s156_s24, %s569_s4 }
   0xd   : > { %p577_p13 = scmp.lt.s32.totalorder %s156_s24, %s156_s24  ;;  %p578_p0 = scmp.lt.s32.totalorder %s569_s4, %s569_s4 }
   0xe   : > { %p748_p7 = pnand %p492_p6, %p725_p1 }
   0xf   : > { %p579_p2 = por %p578_p0, %p577_p13 }
  0x10   : > { %495 = dma.hbm_to_smem (!%p748_p7), %s872_s0, 64, %s672_s28, [#allocation4]  }
  0x11   : > { %p571_p10 = pneg %p748_p7 }
  0x13   : > { %p572_p11 = pnand %p571_p10, %p570_p9 }
  0x15   : > { %p573_p12 = pneg %p572_p11 }
  0x17   : > { %p580_p3 = pnand %p579_p2, %p573_p12 }
  0x19   : > { %583 = shalt.err (!%p580_p3)
}
  0x1a   : > { %s673_s5 = smov [#allocation6]   ;;  %s890_s26 = smov (%p753_p8, %s30_s26), 0 }
  0x1b   : > { %498 = dma.vmem_to_smem (!%p748_p7), %s156_s24, 16, %s673_s5, [#allocation5]  }
  0x1c   : > { %s81_s6 = sadd.s32 1, %s658_s14  ;;  %p88_p6 = scmp.ne.s32.totalorder %s658_s14, %s654_s13 }
  0x1d   : > { %s76_s7 = ssub.s32 %s666_s16, %s890_s26  ;;  %p89_p9 = scmp.eq.s32.totalorder %s670_s17, 0 }
  0x1e   : > { %p79_p10 = scmp.eq.s32.totalorder %s76_s7, 0  ;;  %p505_p11 = scmp.lt.s32.totalorder %s670_s17, 2 }
  0x1f   : > { %p90_p12 = por %p89_p9, %p88_p6  ;;  %s166_s8 = sand.u32 1, %s658_s14  }
  0x20   : > { %s779_s9 = scalar_select %p79_p10, %s658_s14, %s81_s6  }
  0x21   : > { %s445_s10 = sshll.u32 %s166_s8, 3  ;;  %s480_s11 = sshll.u32 %s666_s16, 7 }
  0x22   : > { %s178_s22 = scalar_lea.hbm %s874_s2, %s480_s11  ;;  %s170_s23 = scalar_lea.vmem [#allocation7], %s445_s10 }
  0x23   : > { %s180_s24 = sshll.u32 %s170_s23, 4  ;;  %p785_p7 = pnand %p505_p11, %p90_p12  ;;  %s181_s24 = int_to_ptr.vmem [resolvable:$true] %s180_s24 }
  0x24   : > { %s167_s27 = scalar_lea.sflag [#allocation3], %s166_s8  ;;  %s597_s28 = scalar_lea.vmem %s181_s24, 128 }
  0x25   : > { %p586_p8 = pneg %p785_p7  ;;  %p598_p13 = scmp.ne.s32.totalorder %s181_s24, %s597_s28 }
  0x26   : > { %s674_s29 = smov [#allocation7]  }
  0x27   : > { %p600_p0 = pnand %p598_p13, %p586_p8  ;;  %s602_s30 = sshll.u32 %s674_s29, 4  ;;  %s603_s30 = int_to_ptr.vmem [resolvable:$false] %s602_s30 }
  0x28   : > { %s604_s4 = scalar_lea.vmem %s603_s30, 256  ;;  %p605_p3 = scmp.lt.s32.totalorder %s181_s24, %s603_s30 }
  0x29   : > { %p601_p2 = pneg %p600_p0  ;;  %p606_p6 = scmp.lt.s32.totalorder %s604_s4, %s597_s28 }
  0x2b   : > { %p607_p9 = por %p606_p6, %p605_p3 }
  0x2d   : > { %p608_p10 = pnand %p607_p9, %p601_p2 }
  0x2f   : > { %611 = shalt.err (!%p608_p10)
}
  0x30   : > { %502 = dma.hbm_to_vmem [thread:$0]  (!%p785_p7), %s178_s22, 128, %s181_s24, %s167_s27  }
  0x31   : > { %189 = sbr.rel (%p737_p5) target bundleno = 92 (0x5c), region = 32 }
  0x36   : > { %637 = dma.done.wait (%p725_p1), [#allocation4], 64  }
  0x37   : > { %639 = vsyncadd (%p725_p1), [#allocation4], 4294967232 }
  0x38   : > { %641 = dma.done.wait (%p725_p1), [#allocation5], 16  }
  0x39   : > { %643 = vsyncadd (%p725_p1), [#allocation5], 4294967280  ;;  %s199_s5 = sand.u32 1, %s654_s13  }
  0x3a   : > { %s451_s6 = sshll.u32 %s199_s5, 3  ;;  %s200_s7 = scalar_lea.sflag [#allocation3], %s199_s5 }
  0x3b   : > { %s804_s8 = scalar_lea.vmem [#allocation7], %s451_s6 }
  0x3c   : > { %645 = dma.done.wait (%p733_p4), %s200_s7, 128  }
  0x3d   : > { %647 = vsyncadd (%p733_p4), %s200_s7, 4294967168 }
  0x3e   : > { %208 = sfence }
  0x3f   : > { %p233_p5 = scmp.lt.s32.totalorder %s662_s15, 1  ;;  %s242_s19 = sld [smem:[#allocation2]]  ;;  %v257_v0 = vld [vmem:[%s804_s8] ss:$4 sm:$0x3]  ;;  %v277_v14 = vlaneseq }
  0x40   : > { %s456_s21 = sld [smem:[#allocation2 + $0x80]]  ;;  %v467_v1 = vld [vmem:[%s804_s8 + $0x1] ss:$4 sm:$0x3] }
  0x41   : > { %s892_s15 = smov (!%p233_p5, %s662_s15), 1  ;;  %s459_s10 = sld [smem:[#allocation2 + $0x100]]  ;;  %v468_v5 = vld [vmem:[%s804_s8 + $0x2] ss:$4 sm:$0x3]  ;;  %vm835_vm0 = vcmp.lt.s32.totalorder %v277_v14, 256 }
  0x42   : > { %s462_s11 = sld [smem:[#allocation2 + $0x180]]  ;;  %v469_v7 = vld [vmem:[%s804_s8 + $0x3] ss:$4 sm:$0x3]  ;;  %s481_s27 = sshll.u32 %s892_s15, 3 }
  0x43   : > { %s815_s12 = sld [smem:[#allocation6]]  ;;  %v282_v12 = vld [vmem:[%s804_s8] ss:$4 sm:$0x3]  ;;  %s833_s15 = scalar_lea.vmem %s875_s3, %s481_s27 }
  0x44   : > { %s454_s20 = sld [smem:[#allocation2 + $0x1]]  ;;  %v470_v15 = vld [vmem:[%s804_s8 + $0x1] ss:$4 sm:$0x3] }
  0x45   : > { %v258_v2 = vstv %s242_s19  ;;  %s457_s18 = sld [smem:[#allocation2 + $0x81]]  ;;  %v471_v18 = vld [vmem:[%s804_s8 + $0x2] ss:$4 sm:$0x3] }
  0x46   : > { %v259_v3 = vmul.f32 %v258_v2, %v257_v0  ;;  %v262_v4 = vstv %s456_s21  ;;  %s460_s22 = sld [smem:[#allocation2 + $0x101]]  ;;  %v472_v22 = vld [vmem:[%s804_s8 + $0x3] ss:$4 sm:$0x3] }
  0x47   : > { %v263_v6 = vmul.f32 %v467_v1, %v262_v4  ;;  %v267_v8 = vstv %s459_s10  ;;  %s820_s23 = sld [smem:[#allocation2 + $0x181]]  ;;  %v301_v29 = vld [vmem:[%s804_s8] ss:$4 sm:$0x3] }
  0x48   : > { %v268_v10 = vmul.f32 %v468_v5, %v267_v8  ;;  %v272_v11 = vstv %s462_s11  ;;  %s822_s24 = sld [smem:[#allocation6 + $0x1]]  ;;  %v474_v33 = vld [vmem:[%s804_s8 + $0x1] ss:$4 sm:$0x3] }
  0x49   : > { %v264_v9 = vadd.f32 %v263_v6, %v259_v3  ;;  %v273_v13 = vmul.f32 %v469_v7, %v272_v11  ;;  %s455_s25 = sld [smem:[#allocation2 + $0x2]]  ;;  %v275_v19 = vstv %s815_s12  ;;  %v475_v35 = vld [vmem:[%s804_s8 + $0x2] ss:$4 sm:$0x3] }
  0x4a   : > { %v283_v17 = vstv %s454_s20  ;;  %s458_s28 = sld [smem:[#allocation2 + $0x82]]  ;;  %v476_v39 = vld [vmem:[%s804_s8 + $0x3] ss:$4 sm:$0x3] }
  0x4b   : > { %v269_v16 = vadd.f32 %v268_v10, %v264_v9  ;;  %v284_v20 = vmul.f32 %v283_v17, %v282_v12  ;;  %v286_v21 = vstv %s457_s18  ;;  %s461_s29 = sld [smem:[#allocation2 + $0x102]] }
  0x4c   : > { %v287_v24 = vmul.f32 %v470_v15, %v286_v21  ;;  %v290_v25 = vstv %s460_s22  ;;  %s464_s30 = sld [smem:[#allocation2 + $0x182]] }
  0x4d   : > { %v274_v23 = vadd.f32 %v273_v13, %v269_v16  ;;  %v291_v27 = vmul.f32 %v471_v18, %v290_v25  ;;  %v294_v28 = vstv %s820_s23  ;;  %s466_s6 = sld [smem:[#allocation6 + $0x2]] }
  0x4e   : > { %v288_v31 = vadd.f32 %v287_v24, %v284_v20  ;;  %v295_v32 = vmul.f32 %v472_v22, %v294_v28  ;;  %v297_v40 = vstv %s822_s24 }
  0x4f   : > { %v276_v30 = vadd.f32 %v275_v19, %v274_v23  ;;  %v302_v34 = vstv %s455_s25 }
  0x50   : > { %v292_v36 = vadd.f32 %v291_v27, %v288_v31  ;;  %v303_v37 = vmul.f32 %v302_v34, %v301_v29  ;;  %v305_v38 = vstv %s458_s28 }
  0x51   : > { %281 = vst.msk [vmem:[%s833_s15] ss:$4 sm:$0x3] %vm835_vm0, %v276_v30  ;;  %v306_v41 = vmul.f32 %v474_v33, %v305_v38  ;;  %v309_v42 = vstv %s461_s29 }
  0x52   : > { %v296_v43 = vadd.f32 %v295_v32, %v292_v36  ;;  %v310_v44 = vmul.f32 %v475_v35, %v309_v42  ;;  %v313_v45 = vstv %s464_s30 }
  0x53   : > { %v307_v46 = vadd.f32 %v306_v41, %v303_v37  ;;  %v314_v47 = vmul.f32 %v476_v39, %v313_v45  ;;  %v316_v50 = vstv %s466_s6 }
  0x54   : > { %v298_v48 = vadd.f32 %v297_v40, %v296_v43 }
  0x55   : > { %v311_v49 = vadd.f32 %v310_v44, %v307_v46 }
  0x56   : > { %473 = vst.msk [vmem:[%s833_s15 + $0x1] ss:$4 sm:$0x3] %vm835_vm0, %v298_v48 }
  0x57   : > { %v315_v51 = vadd.f32 %v314_v47, %v311_v49 }
  0x59   : > { %v317_v52 = vadd.f32 %v316_v50, %v315_v51 }
  0x5b   : > { %477 = vst.msk [vmem:[%s833_s15 + $0x2] ss:$4 sm:$0x3] %vm835_vm0, %v317_v52 }
  0x5c PF: > { %s18_s17 = sadd.s32 1, %s670_s17   ;;  %s884_s12 = smov %s654_s13 }
  0x5d   : > { %p15_p1 = scmp.ge.s32.totalorder %s18_s17, 4   ;;  %s885_s13 = smov %s658_s14 }
  0x5e   : > { %s886_s14 = smov %s779_s9  ;;  %s887_s15 = smov %s666_s16 }
  0x5f   : > { %s888_s16 = smov %s890_s26  ;;  %17 = sbr.rel (!%p15_p1) target bundleno = 6 (0x6), region = 87 }
  0x64   :  { %350 = vsyncpa [#allocation3], 1 }
  0x65   :  { %352 = vsyncpa [#allocation3 + $0x1], 1 }
  0x66   :  { %353 = vsyncpa [#allocation4], 1 }
  0x67   :  { %355 = vsyncpa [#allocation4 + $0x1], 1 }
  0x68   :  { %356 = vsyncpa [#allocation5], 1 }
  0x69   :  { %358 = vsyncpa [#allocation5 + $0x1], 1 }

</bundles_post_ra>
